<compile_context>
chip_gen: v6e
topology: v6e:2x2x1
jax: 0.10.0
libtpu: 0.0.40
codegen_flags: <defaults>
</compile_context>

<pallas_src>
import jax
import jax.numpy as jnp
import numpy as np
from jax import lax
from jax.experimental import pallas as pl
from jax.experimental.pallas import tpu as pltpu

EPS = 1e-12  # F.normalize default eps (denominator = max(norm, eps))


def _embednet_kernel(x_ref, wbt_ref, bb_ref, wat_ref, ba_ref, cent_ref,
                     pool_ref, vlad_ref):
    # x_ref    : (B, C_in, HW)   one batch tile, lanes = spatial positions
    # wbt_ref  : (D, C_in) bf16  base 1x1 conv weight (transposed)
    # bb_ref   : (D, 1)    f32   base conv bias (column)
    # wat_ref  : (K, D)    bf16  NetVLAD soft-assign conv weight (transposed)
    # ba_ref   : (K, 1)    f32   NetVLAD soft-assign bias (column)
    # cent_ref : (K, D)    f32   NetVLAD centroids
    # pool_ref : (1, B, pool_pad)         pooled feature, zero-padded to a 128-lane slab
    # vlad_ref : (1, B, K*D) or (1, B, K, D)  normalized VLAD descriptors
    b_tile, c_in, hw = x_ref.shape
    d = wbt_ref.shape[0]
    k = wat_ref.shape[0]
    pool_pad = pool_ref.shape[-1]

    x = x_ref[...].astype(jnp.bfloat16)                                    # (B, C, HW)

    # ---- base_model: 1x1 conv + ReLU (batched matmul, lanes = HW, f32 accumulate) ----
    wbt_b = jnp.broadcast_to(wbt_ref[...], (b_tile, d, c_in))              # tiny broadcast
    feat = jnp.einsum('bdc,bch->bdh', wbt_b, x,
                      preferred_element_type=jnp.float32)                  # (B, D, HW)
    feat = jnp.maximum(feat + bb_ref[...], 0.0)                            # f32

    # ---- global average pool -> (B, D) lane-major via one batched 1-row MXU reduce ----
    ones_hw = jnp.ones((b_tile, 1, hw), jnp.bfloat16)
    pool = jnp.einsum('bih,bdh->bid', ones_hw, feat.astype(jnp.bfloat16),
                      preferred_element_type=jnp.float32)[:, 0, :] * (1.0 / hw)
    if pool_pad > d:
        pool = jnp.concatenate(
            [pool, jnp.zeros((b_tile, pool_pad - d), jnp.float32)], axis=1)
    pool_ref[0] = pool                                                     # (B, pool_pad)

    # ---- NetVLAD input normalization: L2 over descriptor dim (sublane axis) ----
    colsq = jnp.sum(feat * feat, axis=1, keepdims=True)                    # (B, 1, HW)
    xn = feat * lax.rsqrt(jnp.maximum(colsq, EPS * EPS))                   # (B, D, HW) f32
    xnb = xn.astype(jnp.bfloat16)

    # ---- soft assignment: 1x1 conv + softmax over K clusters (sublane axis) ----
    wat_b = jnp.broadcast_to(wat_ref[...], (b_tile, k, d))
    logits = jnp.einsum('bkd,bdh->bkh', wat_b, xnb,
                        preferred_element_type=jnp.float32) + ba_ref[...]  # (B, K, HW)
    logits = logits - jnp.max(logits, axis=1, keepdims=True)
    e = jnp.exp(logits)
    a = e * pl.reciprocal(jnp.sum(e, axis=1, keepdims=True), approx=True)  # (B, K, HW)

    # ---- VLAD aggregation: vlad[b,k,d] = sum_h a[b,k,h]*xn[b,d,h] - (sum_h a[b,k,h])*c[k,d]
    atx = jnp.einsum('bkh,bdh->bkd', a.astype(jnp.bfloat16), xnb,
                     preferred_element_type=jnp.float32)                   # (B, K, D)
    asum = jnp.sum(a, axis=2, keepdims=True)                               # (B, K, 1)
    vlad = atx - asum * cent_ref[...]                                      # (B, K, D) f32

    # ---- fused intra-(per-cluster) + global L2 normalization ----
    rowsq = jnp.sum(vlad * vlad, axis=2, keepdims=True)                    # (B, K, 1)
    intra = lax.rsqrt(jnp.maximum(rowsq, EPS * EPS))                       # 1/max(||row||,eps)
    gsq = jnp.sum(rowsq * intra * intra, axis=1, keepdims=True)            # (B, 1, 1)
    gscale = lax.rsqrt(jnp.maximum(gsq, EPS * EPS))
    vlad = vlad * (intra * gscale)                                         # (B, K, D)

    if vlad_ref.ndim == 3:           # D < 128: flatten in-kernel for lane-dense stores
        vlad_ref[0] = vlad.reshape(b_tile, k * d)
    else:                            # D % 128 == 0: store (B, K, D), flatten in wrapper
        vlad_ref[0] = vlad


def _vmem_capacity_bytes():
    try:
        cap = getattr(pltpu.get_tpu_info(), "vmem_capacity_bytes", None)
        if cap:
            return int(cap)
    except Exception:
        pass
    return 64 * 1024 * 1024   # conservative default (v7x per-TensorCore VMEM)


def _choose_batch_tile(n, per_sample_x_bytes, per_sample_work_bytes, vmem_budget,
                       target_block_bytes=2 << 20):
    """Largest divisor of n that respects the VMEM budget and DMA block-size target,
    while keeping the grid >= 4 steps (>= 2 for tiny n) for dual-TC pipelining."""
    if n <= 1:
        return 1
    min_grid = 4 if n >= 4 else 2
    cap = min(max(1, vmem_budget // max(per_sample_work_bytes, 1)),
              max(1, target_block_bytes // max(per_sample_x_bytes, 1)),
              max(1, n // min_grid))
    best = 1
    for t in range(1, min(cap, n) + 1):
        if n % t == 0:
            best = t
    return best


def embednet_forward(x_nchw, params, *, batch_tile=None, target_block_bytes=2 << 20):
    """x_nchw: (N, C_in, H, W).  Returns (pool_x (N, D), vlad_x (N, K*D))."""
    wb, bb, wa, ba, cent = (params["w_base"], params["b_base"],
                            params["w_assign"], params["b_assign"],
                            params["centroids"])
    N, C_in, H, W = x_nchw.shape
    HW = H * W
    D = wb.shape[1]
    K = wa.shape[1]

    # Free reshape (no dim reorder) — no extra HBM pass; kernel blocks index the N axis.
    x3 = x_nchw.reshape(N, C_in, HW)
    wbt = wb.T.astype(jnp.bfloat16)                 # (D, C_in)
    bbc = bb.reshape(D, 1).astype(jnp.float32)
    wat = wa.T.astype(jnp.bfloat16)                 # (K, D)
    bac = ba.reshape(K, 1).astype(jnp.float32)
    cent_f = cent.astype(jnp.float32)

    pool_pad = ((D + 127) // 128) * 128
    flat_out = (D % 128 != 0)

    # ---- generation-aware tiling ----
    vmem_cap = _vmem_capacity_bytes()
    per_x = C_in * HW * x3.dtype.itemsize
    per_work = (2 * per_x                                   # x block, double-buffered
                + (2 * D + 2 * K) * HW * 4                  # f32 intermediates (feat/xn, logits/a)
                + (C_in + D + K) * HW * 2                   # bf16 matmul operands
                + 2 * (pool_pad + K * D) * 4)               # double-buffered output blocks
    if batch_tile is None:
        batch_tile = _choose_batch_tile(N, per_x, per_work, int(vmem_cap * 0.6),
                                        target_block_bytes=target_block_bytes)
    assert N % batch_tile == 0
    G = N // batch_tile

    weights_bytes = (D * C_in + K * D) * 2 + (D + K + K * D) * 4
    est_step_bytes = batch_tile * per_work + weights_bytes
    vmem_limit = int(min(vmem_cap * 0.9, max(32 << 20, 2 * est_step_bytes)))

    cost = pl.CostEstimate(
        flops=int(2 * N * HW * (C_in * D + D * K + K * D + D)),
        transcendentals=int(N * HW * (K + 1)),
        bytes_accessed=int(x3.size * x3.dtype.itemsize
                           + (D * C_in + K * D) * 2 + (D + K + K * D) * 4
                           + N * (pool_pad + K * D) * 4))

    if flat_out:
        vlad_spec = pl.BlockSpec((1, batch_tile, K * D), lambda n: (n, 0, 0))
        vlad_shape = jax.ShapeDtypeStruct((G, batch_tile, K * D), jnp.float32)
    else:
        vlad_spec = pl.BlockSpec((1, batch_tile, K, D), lambda n: (n, 0, 0, 0))
        vlad_shape = jax.ShapeDtypeStruct((G, batch_tile, K, D), jnp.float32)

    pool_raw, vlad_raw = pl.pallas_call(
        _embednet_kernel,
        grid=(G,),
        in_specs=[
            pl.BlockSpec((batch_tile, C_in, HW), lambda n: (n, 0, 0)),
            pl.BlockSpec((D, C_in), lambda n: (0, 0)),
            pl.BlockSpec((D, 1), lambda n: (0, 0)),
            pl.BlockSpec((K, D), lambda n: (0, 0)),
            pl.BlockSpec((K, 1), lambda n: (0, 0)),
            pl.BlockSpec((K, D), lambda n: (0, 0)),
        ],
        out_specs=[
            pl.BlockSpec((1, batch_tile, pool_pad), lambda n: (n, 0, 0)),
            vlad_spec,
        ],
        out_shape=[
            jax.ShapeDtypeStruct((G, batch_tile, pool_pad), jnp.float32),
            vlad_shape,
        ],
        compiler_params=pltpu.CompilerParams(
            dimension_semantics=("parallel",),
            vmem_limit_bytes=vmem_limit),
        cost_estimate=cost,
    )(x3, wbt, bbc, wat, bac, cent_f)

    pool_x = pool_raw.reshape(N, pool_pad)[:, :D]
    vlad_x = vlad_raw.reshape(N, K * D)
    return pool_x, vlad_x


def embednet_reference(x_nchw, params):
    """Pure-JAX reference mirroring the PyTorch forward, for correctness check."""
    wb, bb, wa, ba, cent = (params["w_base"], params["b_base"],
                            params["w_assign"], params["b_assign"],
                            params["centroids"])
    N, C_in, H, W = x_nchw.shape
    K, D = cent.shape
    x = jnp.transpose(x_nchw, (0, 2, 3, 1)).reshape(N, H * W, C_in)
    feat = jnp.maximum(jnp.einsum("npc,cd->npd", x, wb) + bb, 0.0)
    pool_x = jnp.mean(feat, axis=1)
    xn = feat / jnp.maximum(jnp.linalg.norm(feat, axis=-1, keepdims=True), EPS)
    logits = jnp.einsum("npd,dk->npk", xn, wa) + ba
    a = jax.nn.softmax(logits, axis=-1)
    atx = jnp.einsum("npk,npd->nkd", a, xn)
    vlad = atx - jnp.sum(a, axis=1)[:, :, None] * cent[None]
    vlad = vlad / jnp.maximum(jnp.linalg.norm(vlad, axis=-1, keepdims=True), EPS)
    vlad = vlad.reshape(N, K * D)
    vlad = vlad / jnp.maximum(jnp.linalg.norm(vlad, axis=-1, keepdims=True), EPS)
    return pool_x, vlad


if __name__ == "__main__":
    # Small shapes consistent with the forward pass.
    N, C_in, H, W = 2, 4, 16, 16
    D, K = 32, 8   # base feature dim, NetVLAD cluster count

    key = jax.random.PRNGKey(0)
    k_x, k_wb, k_bb, k_wa, k_ba, k_c = jax.random.split(key, 6)

    x = jax.random.normal(k_x, (N, C_in, H, W), dtype=jnp.float32)
    params = {
        "w_base": jax.random.normal(k_wb, (C_in, D), dtype=jnp.float32) * 0.1,
        "b_base": jax.random.normal(k_bb, (1, D), dtype=jnp.float32) * 0.1,
        "w_assign": jax.random.normal(k_wa, (D, K), dtype=jnp.float32) * 0.1,
        "b_assign": jax.random.normal(k_ba, (1, K), dtype=jnp.float32) * 0.1,
        "centroids": jax.random.normal(k_c, (K, D), dtype=jnp.float32),
    }

    pool_x, vlad_x = embednet_forward(x, params)
    jax.block_until_ready((pool_x, vlad_x))

    ref_pool, ref_vlad = embednet_reference(x, params)
    np.testing.assert_allclose(np.asarray(pool_x), np.asarray(ref_pool), rtol=2e-2, atol=2e-2)
    np.testing.assert_allclose(np.asarray(vlad_x), np.asarray(ref_vlad), rtol=2e-2, atol=2e-2)

    print("KERNEL_OK")
</pallas_src>

<mosaic_0001>
module attributes {stable_mosaic.version = 11 : i64} {
  func.func @_embednet_kernel(%arg0: i32, %arg1: memref<1x4x256xf32, #tpu.memory_space<vmem>>, %arg2: memref<32x4xbf16, #tpu.memory_space<vmem>>, %arg3: memref<32x1xf32, #tpu.memory_space<vmem>>, %arg4: memref<8x32xbf16, #tpu.memory_space<vmem>>, %arg5: memref<8x1xf32, #tpu.memory_space<vmem>>, %arg6: memref<8x32xf32, #tpu.memory_space<vmem>>, %arg7: memref<1x1x128xf32, #tpu.memory_space<vmem>>, %arg8: memref<1x1x256xf32, #tpu.memory_space<vmem>>) attributes {dimension_semantics = [#tpu.dimension_semantics<parallel>], iteration_bounds = array<i64: 2>, scalar_prefetch = 0 : i64, scratch_operands = 0 : i64, tpu.core_type = #tpu.core_type<tc>, window_params = [{transform_indices = @transform_0, window_bounds = array<i64: 1, 4, 256>}, {pipeline_mode = #tpu.pipeline_mode<synchronous>, transform_indices = @transform_1, window_bounds = array<i64: 32, 4>}, {pipeline_mode = #tpu.pipeline_mode<synchronous>, transform_indices = @transform_2, window_bounds = array<i64: 32, 1>}, {pipeline_mode = #tpu.pipeline_mode<synchronous>, transform_indices = @transform_3, window_bounds = array<i64: 8, 32>}, {pipeline_mode = #tpu.pipeline_mode<synchronous>, transform_indices = @transform_4, window_bounds = array<i64: 8, 1>}, {pipeline_mode = #tpu.pipeline_mode<synchronous>, transform_indices = @transform_5, window_bounds = array<i64: 8, 32>}, {transform_indices = @transform_6, window_bounds = array<i64: 1, 1, 128>}, {transform_indices = @transform_7, window_bounds = array<i64: 1, 1, 256>}]} {
    %c0 = arith.constant 0 : index
    %c0_0 = arith.constant 0 : index
    %c0_1 = arith.constant 0 : index
    %0 = vector.load %arg1[%c0, %c0_0, %c0_1] : memref<1x4x256xf32, #tpu.memory_space<vmem>>, vector<1x4x256xf32>
    %1 = arith.truncf %0 : vector<1x4x256xf32> to vector<1x4x256xbf16>
    %c0_2 = arith.constant 0 : index
    %c0_3 = arith.constant 0 : index
    %2 = vector.load %arg2[%c0_2, %c0_3] : memref<32x4xbf16, #tpu.memory_space<vmem>>, vector<32x4xbf16>
    %3 = vector.shape_cast %2 : vector<32x4xbf16> to vector<1x32x4xbf16>
    "tpu.trace_start"() <{level = 10 : i32, message = "bdc,bch->bdh"}> : () -> ()
    %cst = arith.constant dense<0.000000e+00> : vector<1x32x256xf32>
    %4 = tpu.matmul %3, %1, %cst {dimension_numbers = #tpu.dot_dimension_numbers<[2], [1], [1], [2], [0, 0, 0, 1, 1, 2], [0], [0]>} : vector<1x32x4xbf16>, vector<1x4x256xbf16>, vector<1x32x256xf32> -> vector<1x32x256xf32>
    "tpu.trace_stop"() : () -> ()
    %c0_4 = arith.constant 0 : index
    %c0_5 = arith.constant 0 : index
    %5 = vector.load %arg3[%c0_4, %c0_5] : memref<32x1xf32, #tpu.memory_space<vmem>>, vector<32x1xf32>
    %6 = vector.shape_cast %5 : vector<32x1xf32> to vector<1x32x1xf32>
    %7 = vector.broadcast %6 : vector<1x32x1xf32> to vector<1x32x256xf32>
    %8 = arith.addf %4, %7 : vector<1x32x256xf32>
    %cst_6 = arith.constant 0.000000e+00 : f32
    %9 = vector.broadcast %cst_6 : f32 to vector<1x32x256xf32>
    %10 = arith.maximumf %8, %9 : vector<1x32x256xf32>
    %cst_7 = arith.constant 1.000000e+00 : bf16
    %11 = vector.broadcast %cst_7 : bf16 to vector<1x1x256xbf16>
    %12 = arith.truncf %10 : vector<1x32x256xf32> to vector<1x32x256xbf16>
    "tpu.trace_start"() <{level = 10 : i32, message = "bih,bdh->bid"}> : () -> ()
    %cst_8 = arith.constant dense<0.000000e+00> : vector<1x1x32xf32>
    %13 = tpu.matmul %11, %12, %cst_8 {dimension_numbers = #tpu.dot_dimension_numbers<[2], [2], [1], [1], [0, 0, 0, 1, 1, 1], [0], [0]>} : vector<1x1x256xbf16>, vector<1x32x256xbf16>, vector<1x1x32xf32> -> vector<1x1x32xf32>
    "tpu.trace_stop"() : () -> ()
    %14 = vector.shape_cast %13 : vector<1x1x32xf32> to vector<1x32xf32>
    %cst_9 = arith.constant 3.906250e-03 : f32
    %15 = vector.broadcast %cst_9 : f32 to vector<1x32xf32>
    %16 = arith.mulf %14, %15 : vector<1x32xf32>
    %cst_10 = arith.constant 0.000000e+00 : f32
    %17 = vector.broadcast %cst_10 : f32 to vector<1x96xf32>
    %18 = tpu.concatenate %16, %17 in 1 : vector<1x32xf32>, vector<1x96xf32> -> vector<1x128xf32>
    %c0_11 = arith.constant 0 : index
    %c0_12 = arith.constant 0 : index
    %c0_13 = arith.constant 0 : index
    %19 = vector.load %arg7[%c0_11, %c0_12, %c0_13] : memref<1x1x128xf32, #tpu.memory_space<vmem>>, vector<1x1x128xf32>
    %20 = vector.shape_cast %19 : vector<1x1x128xf32> to vector<1x128xf32>
    %21 = vector.shape_cast %18 : vector<1x128xf32> to vector<1x1x128xf32>
    tpu.vector_store %arg7[%c0_11, %c0_12, %c0_13], %21 {strides = array<i32>} : memref<1x1x128xf32, #tpu.memory_space<vmem>>, vector<1x1x128xf32>,
    %22 = arith.mulf %10, %10 : vector<1x32x256xf32>
    %cst_14 = arith.constant dense<0.000000e+00> : vector<1x256xf32>
    %23 = vector.multi_reduction <add>, %22, %cst_14 [1] : vector<1x32x256xf32> to vector<1x256xf32>
    %24 = vector.shape_cast %23 : vector<1x256xf32> to vector<1x1x256xf32>
    %cst_15 = arith.constant 1.000000e-24 : f32
    %25 = vector.broadcast %cst_15 : f32 to vector<1x1x256xf32>
    %26 = arith.maximumf %24, %25 : vector<1x1x256xf32>
    %27 = math.rsqrt %26 : vector<1x1x256xf32>
    %28 = vector.broadcast %27 : vector<1x1x256xf32> to vector<1x32x256xf32>
    %29 = arith.mulf %10, %28 : vector<1x32x256xf32>
    %30 = arith.truncf %29 : vector<1x32x256xf32> to vector<1x32x256xbf16>
    %c0_16 = arith.constant 0 : index
    %c0_17 = arith.constant 0 : index
    %31 = vector.load %arg4[%c0_16, %c0_17] : memref<8x32xbf16, #tpu.memory_space<vmem>>, vector<8x32xbf16>
    %32 = vector.shape_cast %31 : vector<8x32xbf16> to vector<1x8x32xbf16>
    "tpu.trace_start"() <{level = 10 : i32, message = "bkd,bdh->bkh"}> : () -> ()
    %cst_18 = arith.constant dense<0.000000e+00> : vector<1x8x256xf32>
    %33 = tpu.matmul %32, %30, %cst_18 {dimension_numbers = #tpu.dot_dimension_numbers<[2], [1], [1], [2], [0, 0, 0, 1, 1, 2], [0], [0]>} : vector<1x8x32xbf16>, vector<1x32x256xbf16>, vector<1x8x256xf32> -> vector<1x8x256xf32>
    "tpu.trace_stop"() : () -> ()
    %c0_19 = arith.constant 0 : index
    %c0_20 = arith.constant 0 : index
    %34 = vector.load %arg5[%c0_19, %c0_20] : memref<8x1xf32, #tpu.memory_space<vmem>>, vector<8x1xf32>
    %35 = vector.shape_cast %34 : vector<8x1xf32> to vector<1x8x1xf32>
    %36 = vector.broadcast %35 : vector<1x8x1xf32> to vector<1x8x256xf32>
    %37 = arith.addf %33, %36 : vector<1x8x256xf32>
    %cst_21 = arith.constant dense<0xFF800000> : vector<1x256xf32>
    %38 = vector.multi_reduction <maximumf>, %37, %cst_21 [1] : vector<1x8x256xf32> to vector<1x256xf32>
    %39 = vector.shape_cast %38 : vector<1x256xf32> to vector<1x1x256xf32>
    %40 = vector.broadcast %39 : vector<1x1x256xf32> to vector<1x8x256xf32>
    %41 = arith.subf %37, %40 : vector<1x8x256xf32>
    %42 = math.exp %41 : vector<1x8x256xf32>
    %cst_22 = arith.constant dense<0.000000e+00> : vector<1x256xf32>
    %43 = vector.multi_reduction <add>, %42, %cst_22 [1] : vector<1x8x256xf32> to vector<1x256xf32>
    %44 = vector.shape_cast %43 : vector<1x256xf32> to vector<1x1x256xf32>
    %45 = tpu.reciprocal %44 {approx = true} : vector<1x1x256xf32> -> vector<1x1x256xf32>
    %46 = vector.broadcast %45 : vector<1x1x256xf32> to vector<1x8x256xf32>
    %47 = arith.mulf %42, %46 : vector<1x8x256xf32>
    %48 = arith.truncf %47 : vector<1x8x256xf32> to vector<1x8x256xbf16>
    "tpu.trace_start"() <{level = 10 : i32, message = "bkh,bdh->bkd"}> : () -> ()
    %cst_23 = arith.constant dense<0.000000e+00> : vector<1x8x32xf32>
    %49 = tpu.matmul %48, %30, %cst_23 {dimension_numbers = #tpu.dot_dimension_numbers<[2], [2], [1], [1], [0, 0, 0, 1, 1, 1], [0], [0]>} : vector<1x8x256xbf16>, vector<1x32x256xbf16>, vector<1x8x32xf32> -> vector<1x8x32xf32>
    "tpu.trace_stop"() : () -> ()
    %cst_24 = arith.constant dense<0.000000e+00> : vector<1x8xf32>
    %50 = vector.multi_reduction <add>, %47, %cst_24 [2] : vector<1x8x256xf32> to vector<1x8xf32>
    %51 = vector.shape_cast %50 : vector<1x8xf32> to vector<1x8x1xf32>
    %c0_25 = arith.constant 0 : index
    %c0_26 = arith.constant 0 : index
    %52 = vector.load %arg6[%c0_25, %c0_26] : memref<8x32xf32, #tpu.memory_space<vmem>>, vector<8x32xf32>
    %53 = vector.shape_cast %52 : vector<8x32xf32> to vector<1x8x32xf32>
    %54 = vector.broadcast %51 : vector<1x8x1xf32> to vector<1x8x32xf32>
    %55 = arith.mulf %54, %53 : vector<1x8x32xf32>
    %56 = arith.subf %49, %55 : vector<1x8x32xf32>
    %57 = arith.mulf %56, %56 : vector<1x8x32xf32>
    %cst_27 = arith.constant dense<0.000000e+00> : vector<1x8xf32>
    %58 = vector.multi_reduction <add>, %57, %cst_27 [2] : vector<1x8x32xf32> to vector<1x8xf32>
    %59 = vector.shape_cast %58 : vector<1x8xf32> to vector<1x8x1xf32>
    %cst_28 = arith.constant 1.000000e-24 : f32
    %60 = vector.broadcast %cst_28 : f32 to vector<1x8x1xf32>
    %61 = arith.maximumf %59, %60 : vector<1x8x1xf32>
    %62 = math.rsqrt %61 : vector<1x8x1xf32>
    %63 = arith.mulf %59, %62 : vector<1x8x1xf32>
    %64 = arith.mulf %63, %62 : vector<1x8x1xf32>
    %cst_29 = arith.constant dense<0.000000e+00> : vector<1x1xf32>
    %65 = vector.multi_reduction <add>, %64, %cst_29 [1] : vector<1x8x1xf32> to vector<1x1xf32>
    %66 = vector.shape_cast %65 : vector<1x1xf32> to vector<1x1x1xf32>
    %cst_30 = arith.constant 1.000000e-24 : f32
    %67 = vector.broadcast %cst_30 : f32 to vector<1x1x1xf32>
    %68 = arith.maximumf %66, %67 : vector<1x1x1xf32>
    %69 = math.rsqrt %68 : vector<1x1x1xf32>
    %70 = vector.broadcast %69 : vector<1x1x1xf32> to vector<1x8x1xf32>
    %71 = arith.mulf %62, %70 : vector<1x8x1xf32>
    %72 = vector.broadcast %71 : vector<1x8x1xf32> to vector<1x8x32xf32>
    %73 = arith.mulf %56, %72 : vector<1x8x32xf32>
    %74 = vector.shape_cast %73 : vector<1x8x32xf32> to vector<1x256xf32>
    %c0_31 = arith.constant 0 : index
    %c0_32 = arith.constant 0 : index
    %c0_33 = arith.constant 0 : index
    %75 = vector.load %arg8[%c0_31, %c0_32, %c0_33] : memref<1x1x256xf32, #tpu.memory_space<vmem>>, vector<1x1x256xf32>
    %76 = vector.shape_cast %75 : vector<1x1x256xf32> to vector<1x256xf32>
    %77 = vector.shape_cast %74 : vector<1x256xf32> to vector<1x1x256xf32>
    tpu.vector_store %arg8[%c0_31, %c0_32, %c0_33], %77 {strides = array<i32>} : memref<1x1x256xf32, #tpu.memory_space<vmem>>, vector<1x1x256xf32>,
    return
  }
  func.func @transform_0(%arg0: i32) -> (i32, i32, i32) {
    %c0_i32 = arith.constant 0 : i32
    %c0_i32_0 = arith.constant 0 : i32
    %c0_i32_1 = arith.constant 0 : i32
    return %arg0, %c0_i32, %c0_i32_0 : i32, i32, i32
  }
  func.func @transform_1(%arg0: i32) -> (i32, i32) {
    %c0_i32 = arith.constant 0 : i32
    %c0_i32_0 = arith.constant 0 : i32
    %c0_i32_1 = arith.constant 0 : i32
    return %c0_i32, %c0_i32_0 : i32, i32
  }
  func.func @transform_2(%arg0: i32) -> (i32, i32) {
    %c0_i32 = arith.constant 0 : i32
    %c0_i32_0 = arith.constant 0 : i32
    %c0_i32_1 = arith.constant 0 : i32
    return %c0_i32, %c0_i32_0 : i32, i32
  }
  func.func @transform_3(%arg0: i32) -> (i32, i32) {
    %c0_i32 = arith.constant 0 : i32
    %c0_i32_0 = arith.constant 0 : i32
    %c0_i32_1 = arith.constant 0 : i32
    return %c0_i32, %c0_i32_0 : i32, i32
  }
  func.func @transform_4(%arg0: i32) -> (i32, i32) {
    %c0_i32 = arith.constant 0 : i32
    %c0_i32_0 = arith.constant 0 : i32
    %c0_i32_1 = arith.constant 0 : i32
    return %c0_i32, %c0_i32_0 : i32, i32
  }
  func.func @transform_5(%arg0: i32) -> (i32, i32) {
    %c0_i32 = arith.constant 0 : i32
    %c0_i32_0 = arith.constant 0 : i32
    %c0_i32_1 = arith.constant 0 : i32
    return %c0_i32, %c0_i32_0 : i32, i32
  }
  func.func @transform_6(%arg0: i32) -> (i32, i32, i32) {
    %c0_i32 = arith.constant 0 : i32
    %c0_i32_0 = arith.constant 0 : i32
    %c0_i32_1 = arith.constant 0 : i32
    return %arg0, %c0_i32, %c0_i32_0 : i32, i32, i32
  }
  func.func @transform_7(%arg0: i32) -> (i32, i32, i32) {
    %c0_i32 = arith.constant 0 : i32
    %c0_i32_0 = arith.constant 0 : i32
    %c0_i32_1 = arith.constant 0 : i32
    return %arg0, %c0_i32, %c0_i32_0 : i32, i32, i32
  }
}

</mosaic_0001>

<bundles_post_ra>
// kernel: tpu_custom_call.1
= control target key start
LH: loop header
LB: loop body
LE: loop exit
PB: predicated region body
PF: predicated region fallthrough
CT: control target
= control target key end

     0   :  { %13 = vsyncpa [#allocation3], 0  ;;  %s1291_s0 = inlined_call_operand.vmem [shape: f32[2,4,256], index: 0, kind: input, shape index: {}]   ;;  %s1292_s1 = inlined_call_operand.vmem [shape: bf16[32,4], index: 1, kind: input, shape index: {}]   ;;  %s1293_s2 = inlined_call_operand.vmem [shape: f32[32,1], index: 2, kind: input, shape index: {}]   ;;  %s1294_s3 = inlined_call_operand.vmem [shape: bf16[8,32], index: 3, kind: input, shape index: {}]   ;;  %s1295_s4 = inlined_call_operand.vmem [shape: f32[8,1], index: 4, kind: input, shape index: {}]   ;;  %s1296_s5 = inlined_call_operand.vmem [shape: f32[8,32], index: 5, kind: input, shape index: {}]   ;;  %s1297_s6 = inlined_call_operand.hbm [shape: f32[2,1,128], index: 6, kind: output, shape index: {0}]   ;;  %s1298_s7 = inlined_call_operand.hbm [shape: f32[2,1,256], index: 7, kind: output, shape index: {1}]  }
   0x1   :  { %15 = vsyncpa [#allocation3 + $0x1], 0 }
   0x2   :  { %16 = vsyncpa [#allocation5], 0 }
   0x3   :  { %18 = vsyncpa [#allocation5 + $0x1], 0  ;;  %s1110_s24 = smov 0   ;;  %s1112_s25 = smov 0  }
   0x4   :  { %s1114_s26 = smov 0   ;;  %s1116_s27 = smov 0  }
   0x5 LB: > { %s1131_s28 = sadd.s32 4294967295, %s1057_s27   ;;  %s872_s29 = sadd.s32 4294967294, %s1057_s27   ;;  %s1057_s27 = sphi %s1116_s27, %s1306_s27   ;;  %s1053_s26 = sphi %s1114_s26, %s1305_s26   ;;  %s1049_s25 = sphi %s1112_s25, %s1304_s25   ;;  %s1045_s24 = sphi %s1110_s24, %s1303_s24  }
   0x6   : > { %s1135_s30 = sadd.s32 1, %s1057_s27   ;;  %s162_s8 = sadd.s32 1, %s1053_s26 }
   0x7   : > { %s159_s9 = ssub.s32 %s1057_s27, %s1135_s30  ;;  %p172_p0 = scmp.ne.s32.totalorder %s1053_s26, %s1049_s25 }
   0x8   : > { %p160_p1 = scmp.eq.s32.totalorder %s159_s9, 0  ;;  %p173_p2 = scmp.eq.s32.totalorder %s1131_s28, 1 }
   0x9   : > { %p178_p3 = scmp.ne.s32.totalorder %s1049_s25, %s1045_s24  ;;  %p179_p4 = scmp.eq.s32.totalorder %s872_s29, 1 }
   0xa   : > { %s1146_s10 = scalar_select %p160_p1, %s1053_s26, %s162_s8  }
   0xb   : > { %p1148_p5 = por %p173_p2, %p172_p0  ;;  %p1152_p6 = por %p179_p4, %p178_p3 }
   0xc   : > { %p875_p7 = scmp.ge.s32.totalorder %s1057_s27, 1  ;;  %p246_p8 = scmp.lt.s32.totalorder %s1057_s27, 3 }
   0xe   : > { %p247_p9 = pnand %p875_p7, %p246_p8 }
   0xf   : > { %p282_p10 = scmp.lt.s32.totalorder (!%p247_p9), %s1131_s28, 1  ;;  %s1208_s20 = sand.u32 (!%p247_p9), 1, %s1049_s25  }
  0x10   : > { %250 = sbr.rel (%p247_p9) target bundleno = 1094 (0x446), region = 44  ;;  %s274_s21 = scalar_lea.vmem (!%p247_p9), [#allocation2], %s1208_s20 }
  0x11   : > { %s1064_s29 = smov (!%p247_p9), 32   ;;  %s1299_s8 = smov (!%p247_p9), 64  }
  0x12   : > { %s886_s9 = sshll.u32 (!%p247_p9), %s1131_s28, 4  ;;  %s771_s16 = sshll.u32 (!%p247_p9), %s274_s21, 4  ;;  %s772_s16 = int_to_ptr.vmem [resolvable:$true] %s771_s16 }
  0x13   : > { %s1229_s15 = scalar_lea.hbm (!%p247_p9), %s1297_s6, %s886_s9  ;;  %s754_s17 = scalar_lea.sflag (!%p247_p9), [#allocation3], %s1208_s20 }
  0x14   : > { %s1066_s19 = smov (!%p247_p9), [#allocation2]  }
  0x15   : > { %v1059_v0 = vmov 0   ;;  %s283_s13 = scalar_select %p282_p10, %s1131_s28, 1  ;;  %v299_v1 = vld [vmem:[%s1293_s2] sm:$0xff]  ;;  %v301_v2 = vld [vmem:[%s1293_s2 + $0x10] sm:$0xff]  ;;  %v300_v3 = vld [vmem:[%s1293_s2 + $0x8] sm:$0xff]  ;;  %vm340_vm0 = vcmask 1041408  }
  0x16   : > { %379 = vmatprep.mubr.bf16.mxu1 %v1059_v0  ;;  %946 = vset.pattern.permute.xlu0 %v1059_v0  ;;  %v302_v4 = vld [vmem:[%s1293_s2 + $0x18] sm:$0xff]  ;;  %v499_v8 = vld [vmem:[%s1295_s4] sm:$0xff]  ;;  %vm333_vm1 = vcmask 31744   ;;  %v950_v12 = vld [vmem:[%s1292_s1 + $0x8] sm:$0xff]   ;;  %v1060_v13 = vmov 1065369472  }
  0x17   : > { %947 = vset.pattern.permute.xlu1 %v1059_v0  ;;  %305 = vperm.xlu0 %946, %v299_v1   ;;  %s891_s18 = sshll.u32 %s283_s13, 3  ;;  %v949_v11 = vld [vmem:[%s1292_s1] sm:$0xff]   ;;  %vm453_vm2 = vcmask 261120   ;;  %s971_s22 = sshll.u32 %s1066_s19, 4  ;;  %s972_s22 = int_to_ptr.vmem [resolvable:$false] %s971_s22 }
  0x18   : > { %315 = vperm.xlu1 %947, %v301_v2   ;;  %s286_s23 = scalar_lea.vmem %s1291_s0, %s891_s18  ;;  %444 = vmatprep.mubr.bf16.mxu0 %v1060_v13  ;;  %s967_s18 = scalar_lea.vmem %s772_s16, 16 }
  0x19   : > { %v289_v5 = vld [vmem:[%s286_s23] sm:$0xff]  ;;  %p968_p11 = scmp.ne.s32.totalorder %s772_s16, %s967_s18  ;;  %s973_s23 = scalar_lea.vmem %s972_s22, 32 }
  0x1a   : > { %v291_v6 = vcombine.high %v289_v5, %v289_v5  ;;  %v293_v7 = vpack.c.bf16 %v289_v5, %v289_v5  ;;  %p974_p0 = scmp.lt.s32.totalorder %s772_s16, %s972_s22  ;;  %p975_p1 = scmp.lt.s32.totalorder %s973_s23, %s967_s18 }
  0x1b   : > { %310 = vperm.xlu0 %946, %v300_v3   ;;  %p969_p12 = pnand %p968_p11, %p1148_p5 }
  0x1c   : > { %320 = vperm.xlu1 %947, %v302_v4   ;;  %v294_v9 = vpack.c.bf16 %v291_v6, %v291_v6  ;;  %v342_v10 = vsel %vm340_vm0, %v293_v7, 0  ;;  %p976_p2 = por %p975_p1, %p974_p0 }
  0x1d   : > { %p970_p13 = pneg %p969_p12 }
  0x1e   : > { %881 = vmatprep.subr.msk.bf16.mxu1 %vm340_vm0, %v294_v9 }
  0x1f   : > { %502 = vperm.xlu0 %946, %v499_v8   ;;  %362 = vmatpush1.bf16.msra.mxu1 %v342_v10  ;;  %p977_p3 = pnand %p976_p2, %p970_p13 }
  0x22   : > { %882 = vmatmul.mubr.msk.bf16.vlgmr.msra.gmra.mxu1 %vm333_vm1, %v949_v11 }
  0x23   : > { %389 = vmatprep.mubr.bf16.mxu1 %v1059_v0 }
  0x2a   : > { %883 = vmatmul.mubr.msk.bf16.gmra.mxu1 %vm333_vm1, %v950_v12 }
  0x92   : > { %v306_v14 = vpop.permute.xlu0 %305 }
  0x93   : > { %v316_v22 = vpop.permute.xlu1 %315 }
  0x96   : > { %v311_v18 = vpop.permute.xlu0 %310 }
  0x97   : > { %v321_v36 = vpop.permute.xlu1 %320 }
  0xe2   : > { %v381_v15 = vpop.f32.mrf.mxu1 }
  0xe3   : > { %v382_v17 = vadd.f32 %v381_v15, %v306_v14 }
  0xe4   : > { %v383_v16 = vpop.f32.mrf.mxu1 }
  0xe5   : > { %v384_v21 = vadd.f32 %v383_v16, %v306_v14  ;;  %v1191_v26 = vmax.f32 %v382_v17, 0.0 }
  0xe6   : > { %v385_v19 = vpop.f32.mrf.mxu1 }
  0xe7   : > { %v386_v20 = vadd.f32 %v385_v19, %v311_v18  ;;  %v401_v30 = vmax.f32 %v384_v21, 0.0  ;;  %v456_v35 = vmul.f32 %v1191_v26, %v1191_v26 }
  0xe8   : > { %v387_v23 = vpop.f32.mrf.mxu1 }
  0xe9   : > { %v1189_v24 = vmax.f32 %v386_v20, 0.0  ;;  %v388_v25 = vadd.f32 %v387_v23, %v311_v18  ;;  %v457_v42 = vmul.f32 %v401_v30, %v401_v30 }
  0xea   : > { %v391_v27 = vpop.f32.mrf.mxu1 }
  0xeb   : > { %v403_v28 = vmax.f32 %v388_v25, 0.0  ;;  %v392_v29 = vadd.f32 %v391_v27, %v316_v22  ;;  %v458_v32 = vmul.f32 %v1189_v24, %v1189_v24  ;;  %v408_v3 = vpack.c.bf16 %v1189_v24, %v1191_v26  ;;  %v498_v25 = vld [vmem:[%s1294_s3] sm:$0xf] }
  0xec   : > { %v393_v31 = vpop.f32.mrf.mxu1 }
  0xed   : > { %v404_v33 = vmax.f32 %v392_v29, 0.0  ;;  %v394_v34 = vadd.f32 %v393_v31, %v316_v22  ;;  %v459_v38 = vmul.f32 %v403_v28, %v403_v28  ;;  %v464_v44 = vadd.f32 %v458_v32, %v456_v35  ;;  %v503_v31 = vpop.permute.xlu0 %502 }
  0xee   : > { %v395_v37 = vpop.f32.mrf.mxu1  ;;  %v409_v59 = vpack.c.bf16 %v403_v28, %v401_v30 }
  0xef   : > { %v460_v39 = vmul.f32 %v404_v33, %v404_v33  ;;  %v405_v40 = vmax.f32 %v394_v34, 0.0  ;;  %v396_v41 = vadd.f32 %v395_v37, %v321_v36  ;;  %v473_v48 = vadd.f32 %v459_v38, %v457_v42 }
  0xf0   : > { %v397_v43 = vpop.f32.mrf.mxu1 }
  0xf1   : > { %v461_v45 = vmul.f32 %v405_v40, %v405_v40  ;;  %v406_v46 = vmax.f32 %v396_v41, 0.0  ;;  %v398_v47 = vadd.f32 %v397_v43, %v321_v36  ;;  %v465_v49 = vadd.f32 %v464_v44, %v460_v39 }
  0xf3   : > { %v462_v50 = vmul.f32 %v406_v46, %v406_v46  ;;  %v407_v51 = vmax.f32 %v398_v47, 0.0  ;;  %v474_v52 = vadd.f32 %v473_v48, %v461_v45  ;;  %v410_v56 = vpack.c.bf16 %v406_v46, %v404_v33 }
  0xf5   : > { %v466_v53 = vadd.f32 %v465_v49, %v462_v50  ;;  %v463_v54 = vmul.f32 %v407_v51, %v407_v51  ;;  %v411_v55 = vpack.c.bf16 %v407_v51, %v405_v40 }
  0xf7   : > { %v467_v57 = vrot.slane %v466_v53, 4  ;;  %v475_v58 = vadd.f32 %v474_v52, %v463_v54  ;;  %424 = vmatprep.subr.bf16.mxu0 %v411_v55 }
  0xf8   : > { %425 = vmatpush1.bf16.xpose.msra.mxu0 %v410_v56 }
  0xf9   : > { %v468_v60 = vadd.f32 %v467_v57, %v466_v53  ;;  %v476_v61 = vrot.slane %v475_v58, 4  ;;  %426 = vmatprep.subr.bf16.mxu0 %v409_v59 }
  0xfb   : > { %v469_v62 = vrot.slane %v468_v60, 2  ;;  %v477_v63 = vadd.f32 %v476_v61, %v475_v58 }
  0xfd   : > { %v470_v1 = vadd.f32 %v469_v62, %v468_v60  ;;  %v478_v2 = vrot.slane %v477_v63, 2 }
  0xff   : > { %v471_v4 = vrot.slane %v470_v1, 1  ;;  %v479_v5 = vadd.f32 %v478_v2, %v477_v63 }
 0x100   : > { %427 = vmatpush1.bf16.xpose.msra.mxu0 %v408_v3 }
 0x101   : > { %v472_v6 = vadd.f32 %v471_v4, %v470_v1  ;;  %v480_v7 = vrot.slane %v479_v5, 1 }
 0x103   : > { %v482_v8 = vmax.f32 %v472_v6, 1e-24  ;;  %v481_v9 = vadd.f32 %v480_v7, %v479_v5 }
 0x105   : > { %951 = vrsqrt.f32 %v482_v8  ;;  %v483_v10 = vmax.f32 %v481_v9, 1e-24 }
 0x107   : > { %953 = vrsqrt.f32 %v483_v10  ;;  %445 = vmatmul.mubr.bf16.vlgmr.msra.gmra.mxu0 %v1060_v13 }
 0x108   : > { %540 = vmatprep.mubr.bf16.mxu0 %v1059_v0 }
 0x112   : > { %v952_v11 = vpop.eup %951 }
 0x113   : > { %v492_v14 = vmul.f32 %v952_v11, %v406_v46  ;;  %v490_v15 = vmul.f32 %v952_v11, %v404_v33  ;;  %v486_v22 = vmul.f32 %v952_v11, %v1191_v26  ;;  %v488_v23 = vmul.f32 %v952_v11, %v1189_v24 }
 0x114   : > { %v954_v12 = vpop.eup %953 }
 0x115   : > { %v493_v16 = vmul.f32 %v954_v12, %v407_v51  ;;  %v491_v17 = vmul.f32 %v954_v12, %v405_v40  ;;  %v487_v18 = vmul.f32 %v954_v12, %v401_v30  ;;  %v489_v19 = vmul.f32 %v954_v12, %v403_v28  ;;  %v628_v12 = vld [vmem:[%s1296_s5] sm:$0xff] }
 0x116   : > { %v496_v21 = vpack.c.bf16 %v492_v14, %v490_v15  ;;  %v494_v0 = vpack.c.bf16 %v488_v23, %v486_v22 }
 0x117   : > { %v497_v20 = vpack.c.bf16 %v493_v16, %v491_v17  ;;  %v495_v13 = vpack.c.bf16 %v489_v19, %v487_v18 }
 0x119   : > { %520 = vmatprep.subr.bf16.mxu0 %v497_v20  ;;  %597 = vmatprep.subr.bf16.mxu1 %v497_v20 }
 0x11a   : > { %521 = vmatpush1.bf16.msra.mxu0 %v496_v21  ;;  %598 = vmatpush1.bf16.xpose.msra.mxu1 %v496_v21 }
 0x11b   : > { %522 = vmatprep.subr.bf16.mxu0 %v495_v13  ;;  %599 = vmatprep.subr.bf16.mxu1 %v495_v13 }
 0x11e   : > { %523 = vmatpush1.bf16.msra.mxu0 %v494_v0 }
 0x121   : > { %884 = vmatmul.mubr.msk.bf16.vlgmr.msra.gmra.mxu0 %vm453_vm2, %v498_v25 }
 0x122   : > { %600 = vmatpush1.bf16.xpose.msra.mxu1 %v494_v0 }
 0x1c7   : > { %v446_v24 = vpop.f32.mrf.mxu0 }
 0x1c8   : > { %v452_v26 = vmul.f32 0.00390625, %v446_v24 }
 0x1c9   : > { %v448_v27 = vpop.f32.mrf.mxu0 }
 0x1ca   : > { %v454_v28 = vsel %vm453_vm2, %v452_v26, 0.0 }
 0x1cb   : > { %v449_v29 = vpop.f32.mrf.mxu0  ;;  %455 = vst [vmem:[%s274_s21] sm:$0x1] %v454_v28 }
 0x1cd   : > { %v450_v30 = vpop.f32.mrf.mxu0 }
 0x1e1   : > { %v542_v32 = vpop.f32.mrf.mxu0 }
 0x1e2   : > { %v543_v33 = vadd.f32 %v542_v32, %v503_v31 }
 0x1e3   : > { %v544_v34 = vpop.f32.mrf.mxu0 }
 0x1e4   : > { %v549_v35 = vrot.slane %v543_v33, 4  ;;  %v545_v36 = vadd.f32 %v544_v34, %v503_v31 }
 0x1e5   : > { %v546_v37 = vpop.f32.mrf.mxu0 }
 0x1e6   : > { %v550_v38 = vmax.f32 %v543_v33, %v549_v35  ;;  %v555_v39 = vrot.slane %v545_v36, 4  ;;  %v653_v35 = vlaneseq }
 0x1e7   : > { %v547_v40 = vpop.f32.mrf.mxu0 }
 0x1e8   : > { %v551_v41 = vrot.slane %v550_v38, 2  ;;  %v556_v42 = vmax.f32 %v545_v36, %v555_v39  ;;  %v1219_v39 = vshrl.u32 %v653_v35, 7 }
 0x1ea   : > { %v552_v43 = vmax.f32 %v550_v38, %v551_v41  ;;  %v557_v44 = vrot.slane %v556_v42, 2 }
 0x1ec   : > { %v553_v45 = vrot.slane %v552_v43, 1  ;;  %v558_v46 = vmax.f32 %v556_v42, %v557_v44 }
 0x1ee   : > { %v554_v47 = vmax.f32 %v552_v43, %v553_v45  ;;  %v559_v48 = vrot.slane %v558_v46, 1 }
 0x1f0   : > { %v561_v49 = vsub.f32 %v543_v33, %v554_v47  ;;  %v560_v50 = vmax.f32 %v558_v46, %v559_v48  ;;  %v1061_v33 = vmov 1983009808   ;;  %v1063_v47 = vmov 0.0  }
 0x1f1   : > { %v651_v34 = vunpack.c.l.s4 %v1061_v33 }
 0x1f2   : > { %v563_v51 = vmul.f32 1.442695, %v561_v49  ;;  %v562_v52 = vsub.f32 %v545_v36, %v560_v50  ;;  %v1062_v36 = vmov 1934713408  }
 0x1f3   : > { %v666_v37 = vunpack.c.l.s4 %v1062_v36  ;;  %v652_v38 = vunpack.c.0.s8 %v651_v34 }
 0x1f4   : > { %955 = vpow2.f32 %v563_v51  ;;  %v565_v53 = vmul.f32 1.442695, %v562_v52 }
 0x1f5   : > { %v667_v40 = vunpack.c.0.s8 %v666_v37  ;;  %v655_v43 = vsub.s32 %v652_v38, %v1219_v39 }
 0x1f6   : > { %957 = vpow2.f32 %v565_v53 }
 0x1f7   : > { %v670_v45 = vsub.s32 %v667_v40, %v1219_v39 }
 0x201   : > { %v956_v54 = vpop.eup %955 }
 0x202   : > { %v567_v55 = vrot.slane %v956_v54, 4 }
 0x203   : > { %v958_v56 = vpop.eup %957 }
 0x204   : > { %v573_v57 = vrot.slane %v958_v56, 4  ;;  %v568_v58 = vadd.f32 %v956_v54, %v567_v55 }
 0x206   : > { %v574_v59 = vadd.f32 %v958_v56, %v573_v57  ;;  %v569_v60 = vrot.slane %v568_v58, 2 }
 0x208   : > { %v575_v61 = vrot.slane %v574_v59, 2  ;;  %v570_v62 = vadd.f32 %v569_v60, %v568_v58 }
 0x20a   : > { %v576_v63 = vadd.f32 %v575_v61, %v574_v59  ;;  %v571_v1 = vrot.slane %v570_v62, 1 }
 0x20c   : > { %v577_v2 = vrot.slane %v576_v63, 1  ;;  %v572_v3 = vadd.f32 %v571_v1, %v570_v62 }
 0x20e   : > { %v578_v4 = vadd.f32 %v577_v2, %v576_v63  ;;  %959 = vrcp.f32 %v572_v3 }
 0x210   : > { %961 = vrcp.f32 %v578_v4 }
 0x21b   : > { %v960_v5 = vpop.eup %959 }
 0x21c   : > { %v581_v7 = vmul.f32 %v960_v5, %v956_v54 }
 0x21d   : > { %v962_v6 = vpop.eup %961 }
 0x21e   : > { %v582_v8 = vmul.f32 %v962_v6, %v958_v56  ;;  %v583_v11 = vpack.c.bf16 %v581_v7, %v581_v7 }
 0x220   : > { %v584_v9 = vpack.c.bf16 %v582_v8, %v582_v8  ;;  %v625_v10 = vadd.f32 %v582_v8, %v581_v7 }
 0x222   : > { %617 = vmatprep.mubr.bf16.mxu1 %v584_v9  ;;  %626 = vadd.xlane.f32.xlu1 %v625_v10 }
 0x223   : > { %618 = vmatmul.mubr.bf16.vlgmr.msra.gmra.mxu1 %v583_v11 }
 0x2ab   : > { %v627_v14 = vpop.xlane.xlu1 %626 }
 0x2ac   : > { %v629_v15 = vmul.f32 %v628_v12, %v627_v14 }
 0x2e3   : > { %v619_v16 = vpop.f32.mrf.mxu1 }
 0x2e4   : > { %v630_v17 = vsub.f32 %v619_v16, %v629_v15 }
 0x2e5   : > { %v621_v18 = vpop.f32.mrf.mxu1 }
 0x2e6   : > { %v631_v19 = vmul.f32 %v630_v17, %v630_v17 }
 0x2e7   : > { %v622_v20 = vpop.f32.mrf.mxu1 }
 0x2e8   : > { %v632_v21 = vsel %vm453_vm2, %v631_v19, 0.0 }
 0x2e9   : > { %633 = vadd.xlane.f32.xlu0 %v632_v21  ;;  %v623_v22 = vpop.f32.mrf.mxu1 }
 0x372   : > { %v634_v23 = vpop.xlane.xlu0 %633 }
 0x373   : > { %v635_v13 = vmax.f32 %v634_v23, 1e-24 }
 0x375   : > { %963 = vrsqrt.f32 %v635_v13 }
 0x382   : > { %v964_v0 = vpop.eup %963 }
 0x383   : > { %v637_v25 = vmul.f32 %v964_v0, %v634_v23 }
 0x385   : > { %v638_v24 = vmul.f32 %v964_v0, %v637_v25 }
 0x387   : > { %v639_v26 = vrot.slane %v638_v24, 4 }
 0x389   : > { %v640_v27 = vadd.f32 %v639_v26, %v638_v24 }
 0x38b   : > { %v641_v28 = vrot.slane %v640_v27, 2 }
 0x38d   : > { %v642_v29 = vadd.f32 %v641_v28, %v640_v27 }
 0x38f   : > { %v643_v30 = vrot.slane %v642_v29, 1 }
 0x391   : > { %v644_v31 = vadd.f32 %v643_v30, %v642_v29 }
 0x393   : > { %v645_v32 = vmax.f32 %v644_v31, 1e-24 }
 0x395   : > { %965 = vrsqrt.f32 %v645_v32 }
 0x3a2   : > { %v966_v41 = vpop.eup %965 }
 0x3a3   : > { %v647_v42 = vmul.f32 %v966_v41, %v964_v0 }
 0x3a5   : > { %v648_v44 = vmul.f32 %v647_v42, %v630_v17 }
 0x3a7   : > { %v656_v46 = vrot.slane %v648_v44, %v655_v43  ;;  %v649_v48 = vcombine.high %v648_v44, %v1063_v47 }
 0x3a9   : > { %v671_v49 = vrot.slane %v656_v46, %v670_v45  ;;  %v664_v50 = vcombine.high %v656_v46, %v1063_v47  ;;  %v663_v51 = vrot.slane %v649_v48, %v655_v43 }
 0x3ab   : > { %v694_v52 = vcombine.high %v671_v49, %v1063_v47  ;;  %v678_v53 = vrot.slane %v664_v50, %v670_v45  ;;  %v686_v54 = vrot.slane %v663_v51, %v670_v45  ;;  %v679_v55 = vcombine.high %v663_v51, %v1063_v47 }
 0x3ad   : > { %699 = vrot.lane.b32.xlu0 %v694_v52, %s1064_s29  ;;  %703 = vrot.lane.b32.xlu1 %v678_v53, %s1299_s8  ;;  %v696_v56 = vcombine.high %v686_v54, %v1063_v47  ;;  %v693_v57 = vrot.slane %v679_v55, %v670_v45 }
 0x3ae   : > { %980 = shalt.err (!%p977_p3)
}
 0x3af   : > { %s981_s21 = scalar_lea.hbm %s1229_s15, 16  ;;  %s985_s14 = scalar_lea.hbm %s1297_s6, 32 }
 0x3b0   : > { %p982_p4 = scmp.ne.s32.totalorder %s1229_s15, %s981_s21  ;;  %p986_p9 = scmp.lt.s32.totalorder %s1229_s15, %s1297_s6 }
 0x3b1   : > { %p987_p10 = scmp.lt.s32.totalorder %s985_s14, %s981_s21 }
 0x3b2   : > { %p983_p7 = pnand %p982_p4, %p1148_p5 }
 0x3b3   : > { %p988_p11 = por %p987_p10, %p986_p9 }
 0x3b4   : > { %p984_p8 = pneg %p983_p7 }
 0x3b6   : > { %p989_p12 = pnand %p988_p11, %p984_p8 }
 0x3b8   : > { %992 = shalt.err (!%p989_p12)
}
 0x3b9   : > { %893 = dma.vmem_to_hbm [thread:$0]  (%p1148_p5), %s772_s16, 16, %s1229_s15, %s754_s17   ;;  %711 = vrot.lane.b32.xlu1 %v696_v56, %s1064_s29  ;;  %v695_v58 = vcombine.high %v678_v53, %v1063_v47  ;;  %v697_v59 = vcombine.high %v693_v57, %v1063_v47  ;;  %v1068_v62 = vmov 1966171168   ;;  %vm723_vm3 = vcmask 523264  }
 0x3ba   : > { %s1302_s18 = smov 64   ;;  %s1067_s22 = smov 96   ;;  %v734_v63 = vunpack.c.l.s4 %v1068_v62  ;;  %vm725_vm4 = vcmask 785408   ;;  %vm750_vm5 = vcmp.lt.s32.totalorder %v653_v35, 256 }
 0x3bb   : > { %715 = vrot.lane.b32.xlu0 %v693_v57, %s1302_s18  ;;  %s876_s29 = sshll.u32 %s1208_s20, 1  ;;  %s892_s8 = sshll.u32 %s1131_s28, 5 }
 0x3bc   : > { %v735_v3 = vunpack.c.0.s8 %v734_v63  ;;  %s281_s15 = scalar_lea.vmem [#allocation4], %s876_s29  ;;  %s783_s21 = scalar_lea.hbm %s1298_s7, %s892_s8 }
 0x3bd   : > { %707 = vrot.lane.b32.xlu1 %v695_v58, %s1067_s22  ;;  %s785_s16 = sshll.u32 %s281_s15, 4  ;;  %s758_s9 = scalar_lea.sflag [#allocation5], %s1208_s20  ;;  %s786_s16 = int_to_ptr.vmem [resolvable:$true] %s785_s16 }
 0x3be   : > { %v738_v9 = vsub.s32 %v735_v3, %v1219_v39  ;;  %s993_s13 = scalar_lea.vmem %s786_s16, 32  ;;  %s1069_s14 = smov [#allocation4]  }
 0x3bf   : > { %719 = vrot.lane.b32.xlu0 %v697_v59, %s1067_s22  ;;  %p994_p13 = scmp.ne.s32.totalorder %s786_s16, %s993_s13  ;;  %s997_s28 = sshll.u32 %s1069_s14, 4  ;;  %s998_s28 = int_to_ptr.vmem [resolvable:$false] %s997_s28 }
 0x3c0   : > { %s999_s19 = scalar_lea.vmem %s998_s28, 64  ;;  %p1000_p2 = scmp.lt.s32.totalorder %s786_s16, %s998_s28 }
 0x3c1   : > { %p995_p0 = pnand %p994_p13, %p1148_p5  ;;  %p1001_p3 = scmp.lt.s32.totalorder %s999_s19, %s993_s13 }
 0x3c3   : > { %p996_p1 = pneg %p995_p0  ;;  %p1002_p4 = por %p1001_p3, %p1000_p2 }
 0x3c5   : > { %p1003_p7 = pnand %p1002_p4, %p996_p1 }
 0x41f   : > { %v700_v60 = vpop.permute.xlu0 %699  ;;  %v704_v61 = vpop.permute.xlu1 %703 }
 0x420   : > { %v722_v4 = vsel %vm453_vm2, %v671_v49, %v700_v60 }
 0x421   : > { %v724_v6 = vsel %vm723_vm3, %v722_v4, %v704_v61 }
 0x42b   : > { %v712_v1 = vpop.permute.xlu1 %711 }
 0x42c   : > { %v727_v5 = vsel %vm453_vm2, %v686_v54, %v712_v1 }
 0x42d   : > { %v716_v2 = vpop.permute.xlu0 %715 }
 0x42e   : > { %v728_v7 = vsel %vm723_vm3, %v727_v5, %v716_v2 }
 0x42f   : > { %v708_v8 = vpop.permute.xlu1 %707 }
 0x430   : > { %v726_v11 = vsel %vm725_vm4, %v724_v6, %v708_v8 }
 0x431   : > { %v720_v10 = vpop.permute.xlu0 %719 }
 0x432   : > { %v729_v12 = vsel %vm725_vm4, %v728_v7, %v720_v10 }
 0x433   : > { %v732_v14 = vcombine.low %v726_v11, %v729_v12 }
 0x435   : > { %v739_v15 = vrot.slane %v732_v14, %v738_v9 }
 0x437   : > { %v746_v16 = vrot.slane %v739_v15, %v738_v9 }
 0x439   : > { %752 = vst.msk [vmem:[%s281_s15] sm:$0x3] %vm750_vm5, %v746_v16 }
 0x43a   : > { %1006 = shalt.err (!%p1003_p7)
}
 0x43b   : > { %s1007_s18 = scalar_lea.hbm %s783_s21, 32  ;;  %s1011_s29 = scalar_lea.hbm %s1298_s7, 64 }
 0x43c   : > { %p1008_p8 = scmp.ne.s32.totalorder %s783_s21, %s1007_s18  ;;  %p1012_p11 = scmp.lt.s32.totalorder %s783_s21, %s1298_s7 }
 0x43d   : > { %p1013_p12 = scmp.lt.s32.totalorder %s1011_s29, %s1007_s18 }
 0x43e   : > { %p1009_p9 = pnand %p1008_p8, %p1148_p5 }
 0x43f   : > { %p1014_p13 = por %p1013_p12, %p1012_p11 }
 0x440   : > { %p1010_p10 = pneg %p1009_p9 }
 0x442   : > { %p1015_p0 = pnand %p1014_p13, %p1010_p10 }
 0x444   : > { %1018 = shalt.err (!%p1015_p0)
}
 0x445   : > { %894 = dma.vmem_to_hbm [thread:$0]  (%p1148_p5), %s786_s16, 32, %s783_s21, %s758_s9  }
 0x446 PF: > { %p904_p1 = scmp.ge.s32.totalorder %s1057_s27, 2  ;;  %s797_s17 = sand.u32 1, %s1045_s24  }
 0x447   : > { %s798_s23 = scalar_lea.sflag [#allocation3], %s797_s17 }
 0x448   : > { %p898_p2 = pnand %p904_p1, %p1152_p6 }
 0x44a   : > { %p899_p3 = pneg %p898_p2 }
 0x44c   : > { %1036 = dma.done.wait (%p899_p3), %s798_s23, 16  }
 0x44d   : > { %1038 = vsyncadd (%p899_p3), %s798_s23, 4294967280  ;;  %s806_s13 = scalar_lea.sflag [#allocation5], %s797_s17 }
 0x44e   : > { %1040 = dma.done.wait (%p899_p3), %s806_s13, 32  }
 0x44f   : > { %1042 = vsyncadd (%p899_p3), %s806_s13, 4294967264  ;;  %p21_p5 = scmp.ge.s32.totalorder %s1135_s30, 4   ;;  %s1303_s24 = smov %s1049_s25 }
 0x450   : > { %s1304_s25 = smov %s1053_s26  ;;  %s1305_s26 = smov %s1146_s10 }
 0x451   : > { %s1306_s27 = smov %s1135_s30  ;;  %23 = sbr.rel (!%p21_p5) target bundleno = 5 (0x5), region = 96 }
 0x456   :  { %811 = vsyncpa [#allocation3], 1 }
 0x457   :  { %813 = vsyncpa [#allocation3 + $0x1], 1 }
 0x458   :  { %814 = vsyncpa [#allocation5], 1 }
 0x459   :  { %816 = vsyncpa [#allocation5 + $0x1], 1 }

</bundles_post_ra>
